<compile_context>
chip_gen: v7x
topology: tpu7x:2x2x1
jax: 0.10.0
libtpu: 0.0.40
codegen_flags: <defaults>
</compile_context>

<pallas_src>
import jax
import jax.numpy as jnp
from jax.experimental import pallas as pl
from jax.experimental.pallas import tpu as pltpu


def _round_up(x, m):
    return ((x + m - 1) // m) * m


def _cdiv(a, b):
    return -(-a // b)


def _mlp_kernel(col_ref, err_ref,          # (TB, E)   native dtype (f32)
                w1_ref, b1_ref,            # (E, H) bf16 / (1, H) f32
                w2_ref, b2_ref,            # (E, H) bf16 / (1, H) f32
                w3a_ref, w3b_ref, b3_ref,  # (H, 256) bf16 x2 / (1, 256) f32
                w4_ref, b4_ref,            # (256, OUT_PAD) bf16 / (1, OUT_PAD) f32
                out_ref):                  # (TB, OUT_PAD) f32
    # Cast activations to bf16 in VMEM (no extra HBM traffic in the wrapper).
    col = col_ref[...].astype(jnp.bfloat16)
    err = err_ref[...].astype(jnp.bfloat16)

    # fc1 / fc2 (f32 accumulate, f32 bias), ReLU on bf16 (bit-identical to f32 ReLU)
    h1 = jnp.dot(col, w1_ref[...], preferred_element_type=jnp.float32) + b1_ref[...]
    h2 = jnp.dot(err, w2_ref[...], preferred_element_type=jnp.float32) + b2_ref[...]
    h1 = jnp.maximum(h1.astype(jnp.bfloat16), 0)
    h2 = jnp.maximum(h2.astype(jnp.bfloat16), 0)

    # fc3 on the implicit concat([h1, h2]) via a split weight, then ReLU.
    h = (jnp.dot(h1, w3a_ref[...], preferred_element_type=jnp.float32)
         + jnp.dot(h2, w3b_ref[...], preferred_element_type=jnp.float32)
         + b3_ref[...])
    h = jnp.maximum(h.astype(jnp.bfloat16), 0)

    # fc4 (lane-padded to a 128-wide, unmasked output store).
    out = jnp.dot(h, w4_ref[...], preferred_element_type=jnp.float32) + b4_ref[...]
    out_ref[...] = out.astype(out_ref.dtype)


def cellclsmodel1_forward(col_name_embed, error_value_embed, packed, *,
                          target_block_b=4096):
    """Pallas TPU forward pass of cellclsmodel1 with packed (bf16) params."""
    B, embed_dim = col_name_embed.shape
    hid = packed["w1"].shape[1]
    fc3_out = packed["w3a"].shape[1]          # 256
    out_pad = packed["w4"].shape[1]           # num_classes padded to multiple of 128
    num_classes = packed["num_classes"]

    # ---- batch tiling ------------------------------------------------------
    # Large tiles amortize the ~0.35us per-grid-step overhead; n_tiles >= 2 when
    # B > 8 keeps both v7x TensorCores busy; cdiv-based block_b bounds the batch
    # padding waste to <8 rows per tile.
    n_tiles = max(1, _cdiv(B, target_block_b))
    if B > 8:
        n_tiles = max(n_tiles, 2)
    block_b = _round_up(_cdiv(B, n_tiles), 8)
    b_pad = _round_up(B, block_b)
    grid = (b_pad // block_b,)

    col = col_name_embed
    err = error_value_embed
    if b_pad != B:
        pad = ((0, b_pad - B), (0, 0))
        col = jnp.pad(col, pad)
        err = jnp.pad(err, pad)

    in_itemsize = jnp.dtype(col.dtype).itemsize

    # ---- VMEM budget (explicit, with headroom; capped for v7x's 64 MiB) -----
    weight_bytes = ((2 * embed_dim * hid + 2 * hid * fc3_out + fc3_out * out_pad) * 2
                    + (2 * hid + fc3_out + out_pad) * 4)
    tile_in_bytes = 2 * block_b * embed_dim * in_itemsize        # col + err tiles
    tile_out_bytes = block_b * out_pad * 4                       # f32 output tile
    tile_mid_bytes = block_b * (2 * hid * 4 + fc3_out * 4        # f32 intermediates
                                + fc3_out * 2 + 2 * hid * 2)     # bf16 copies
    vmem_est = 2 * (tile_in_bytes + tile_out_bytes) + 2 * weight_bytes + tile_mid_bytes
    vmem_limit = int(min(48 * 1024 * 1024, max(16 * 1024 * 1024, 2 * vmem_est)))

    # ---- advisory cost estimate for XLA's scheduler --------------------------
    flops = 2 * b_pad * (2 * embed_dim * hid + 2 * hid * fc3_out + fc3_out * out_pad)
    bytes_accessed = (2 * b_pad * embed_dim * in_itemsize     # activations in
                      + b_pad * out_pad * 4                   # output
                      + weight_bytes)

    out = pl.pallas_call(
        _mlp_kernel,
        out_shape=jax.ShapeDtypeStruct((b_pad, out_pad), jnp.float32),
        grid_spec=pltpu.PrefetchScalarGridSpec(
            num_scalar_prefetch=0,
            grid=grid,
            in_specs=[
                # streamed activation tiles (batch-parallel)
                pl.BlockSpec((block_b, embed_dim), lambda i: (i, 0)),
                pl.BlockSpec((block_b, embed_dim), lambda i: (i, 0)),
                # VMEM-resident weights / biases (constant index maps)
                pl.BlockSpec((embed_dim, hid), lambda i: (0, 0)),
                pl.BlockSpec((1, hid), lambda i: (0, 0)),
                pl.BlockSpec((embed_dim, hid), lambda i: (0, 0)),
                pl.BlockSpec((1, hid), lambda i: (0, 0)),
                pl.BlockSpec((hid, fc3_out), lambda i: (0, 0)),
                pl.BlockSpec((hid, fc3_out), lambda i: (0, 0)),
                pl.BlockSpec((1, fc3_out), lambda i: (0, 0)),
                pl.BlockSpec((fc3_out, out_pad), lambda i: (0, 0)),
                pl.BlockSpec((1, out_pad), lambda i: (0, 0)),
            ],
            out_specs=pl.BlockSpec((block_b, out_pad), lambda i: (i, 0)),
        ),
        compiler_params=pltpu.CompilerParams(
            dimension_semantics=("parallel",),     # shard batch grid across v7x's 2 TCs
            vmem_limit_bytes=vmem_limit,
        ),
        cost_estimate=pl.CostEstimate(
            flops=flops, transcendentals=0, bytes_accessed=bytes_accessed),
    )(col, err,
      packed["w1"], packed["b1"],
      packed["w2"], packed["b2"],
      packed["w3a"], packed["w3b"], packed["b3"],
      packed["w4"], packed["b4"])

    return out[:B, :num_classes]


# ----------------------------------------------------------------------------
# Parameter construction (mimics nn.Linear init), packing and references.
# ----------------------------------------------------------------------------

def init_params(key, embed_dim, hidden_dim, num_classes):
    """f32 params in PyTorch semantics (weights already transposed to (in, out))."""
    def linear(k, fan_in, fan_out):
        kw, kb = jax.random.split(k)
        bound = 1.0 / (fan_in ** 0.5)
        w = jax.random.uniform(kw, (fan_in, fan_out), jnp.float32, -bound, bound)
        b = jax.random.uniform(kb, (1, fan_out), jnp.float32, -bound, bound)
        return w, b

    k1, k2, k3, k4 = jax.random.split(key, 4)
    w1, b1 = linear(k1, embed_dim, hidden_dim)
    w2, b2 = linear(k2, embed_dim, hidden_dim)
    w3, b3 = linear(k3, hidden_dim * 2, 256)
    w4, b4 = linear(k4, 256, num_classes)
    return dict(w1=w1, b1=b1, w2=w2, b2=b2, w3=w3, b3=b3, w4=w4, b4=b4)


def pack_params(p, num_classes):
    """Split fc3 for the implicit concat; lane-pad fc4 to 128; bf16 matmul weights."""
    hid2 = p["w3"].shape[0]
    hid = hid2 // 2
    out_pad = _round_up(num_classes, 128)
    pad_cols = out_pad - num_classes
    w4p = jnp.pad(p["w4"], ((0, 0), (0, pad_cols)))
    b4p = jnp.pad(p["b4"], ((0, 0), (0, pad_cols)))
    bf16 = jnp.bfloat16
    f32 = jnp.float32
    return dict(
        w1=p["w1"].astype(bf16), b1=p["b1"].astype(f32),
        w2=p["w2"].astype(bf16), b2=p["b2"].astype(f32),
        w3a=p["w3"][:hid].astype(bf16), w3b=p["w3"][hid:].astype(bf16),
        b3=p["b3"].astype(f32),
        w4=w4p.astype(bf16), b4=b4p.astype(f32),
        num_classes=num_classes,
    )


def reference_forward_f32(col, err, p):
    """Pure-f32 reference matching the PyTorch module exactly."""
    h1 = col @ p["w1"] + p["b1"]
    h2 = err @ p["w2"] + p["b2"]
    x = jnp.maximum(jnp.concatenate([h1, h2], axis=1), 0.0)
    x = jnp.maximum(x @ p["w3"] + p["b3"], 0.0)
    return x @ p["w4"] + p["b4"]


def reference_forward_bf16(col, err, packed):
    """bf16-operand / f32-accumulate reference matching the kernel's numerics."""
    col = col.astype(jnp.bfloat16)
    err = err.astype(jnp.bfloat16)
    h1 = jnp.dot(col, packed["w1"], preferred_element_type=jnp.float32) + packed["b1"]
    h2 = jnp.dot(err, packed["w2"], preferred_element_type=jnp.float32) + packed["b2"]
    h1 = jnp.maximum(h1.astype(jnp.bfloat16), 0)
    h2 = jnp.maximum(h2.astype(jnp.bfloat16), 0)
    h = (jnp.dot(h1, packed["w3a"], preferred_element_type=jnp.float32)
         + jnp.dot(h2, packed["w3b"], preferred_element_type=jnp.float32)
         + packed["b3"])
    h = jnp.maximum(h.astype(jnp.bfloat16), 0)
    out = jnp.dot(h, packed["w4"], preferred_element_type=jnp.float32) + packed["b4"]
    return out[:, :packed["num_classes"]]


if __name__ == "__main__":
    B, embed_dim, hidden_dim, num_classes = 8, 32, 32, 10

    key = jax.random.PRNGKey(0)
    kp, kc, ke = jax.random.split(key, 3)

    params_f32 = init_params(kp, embed_dim, hidden_dim, num_classes)
    packed = pack_params(params_f32, num_classes)

    col_name_embed = jax.random.normal(kc, (B, embed_dim), jnp.float32)
    error_value_embed = jax.random.normal(ke, (B, embed_dim), jnp.float32)

    out = cellclsmodel1_forward(col_name_embed, error_value_embed, packed)
    out = jax.block_until_ready(out)

    assert out.shape == (B, num_classes)

    # Tight check vs. a reference that uses identical bf16/f32 numerics.
    ref_bf16 = reference_forward_bf16(col_name_embed, error_value_embed, packed)
    assert jnp.allclose(out, ref_bf16, atol=2e-3, rtol=2e-3), "mismatch vs bf16 reference"

    # Loose sanity check vs. the pure-f32 PyTorch-equivalent math.
    ref_f32 = reference_forward_f32(col_name_embed, error_value_embed, params_f32)
    assert jnp.allclose(out, ref_f32, atol=1e-1, rtol=1e-1), "mismatch vs f32 reference"

    print("KERNEL_OK")
</pallas_src>

<mosaic_0001>
module attributes {stable_mosaic.version = 11 : i64} {
  func.func @_mlp_kernel(%arg0: i32, %arg1: memref<8x32xf32, #tpu.memory_space<vmem>>, %arg2: memref<8x32xf32, #tpu.memory_space<vmem>>, %arg3: memref<32x32xbf16, #tpu.memory_space<vmem>>, %arg4: memref<1x32xf32, #tpu.memory_space<vmem>>, %arg5: memref<32x32xbf16, #tpu.memory_space<vmem>>, %arg6: memref<1x32xf32, #tpu.memory_space<vmem>>, %arg7: memref<32x256xbf16, #tpu.memory_space<vmem>>, %arg8: memref<32x256xbf16, #tpu.memory_space<vmem>>, %arg9: memref<1x256xf32, #tpu.memory_space<vmem>>, %arg10: memref<256x128xbf16, #tpu.memory_space<vmem>>, %arg11: memref<1x128xf32, #tpu.memory_space<vmem>>, %arg12: memref<8x128xf32, #tpu.memory_space<vmem>>) attributes {dimension_semantics = [#tpu.dimension_semantics<parallel>], iteration_bounds = array<i64: 1>, scalar_prefetch = 0 : i64, scratch_operands = 0 : i64, tpu.core_type = #tpu.core_type<tc>, window_params = [{transform_indices = @transform_0, window_bounds = array<i64: 8, 32>}, {transform_indices = @transform_1, window_bounds = array<i64: 8, 32>}, {pipeline_mode = #tpu.pipeline_mode<synchronous>, transform_indices = @transform_2, window_bounds = array<i64: 32, 32>}, {pipeline_mode = #tpu.pipeline_mode<synchronous>, transform_indices = @transform_3, window_bounds = array<i64: 1, 32>}, {pipeline_mode = #tpu.pipeline_mode<synchronous>, transform_indices = @transform_4, window_bounds = array<i64: 32, 32>}, {pipeline_mode = #tpu.pipeline_mode<synchronous>, transform_indices = @transform_5, window_bounds = array<i64: 1, 32>}, {pipeline_mode = #tpu.pipeline_mode<synchronous>, transform_indices = @transform_6, window_bounds = array<i64: 32, 256>}, {pipeline_mode = #tpu.pipeline_mode<synchronous>, transform_indices = @transform_7, window_bounds = array<i64: 32, 256>}, {pipeline_mode = #tpu.pipeline_mode<synchronous>, transform_indices = @transform_8, window_bounds = array<i64: 1, 256>}, {pipeline_mode = #tpu.pipeline_mode<synchronous>, transform_indices = @transform_9, window_bounds = array<i64: 256, 128>}, {pipeline_mode = #tpu.pipeline_mode<synchronous>, transform_indices = @transform_10, window_bounds = array<i64: 1, 128>}, {transform_indices = @transform_11, window_bounds = array<i64: 8, 128>}]} {
    %c0 = arith.constant 0 : index
    %c0_0 = arith.constant 0 : index
    %0 = vector.load %arg1[%c0, %c0_0] : memref<8x32xf32, #tpu.memory_space<vmem>>, vector<8x32xf32>
    %1 = arith.truncf %0 : vector<8x32xf32> to vector<8x32xbf16>
    %c0_1 = arith.constant 0 : index
    %c0_2 = arith.constant 0 : index
    %2 = vector.load %arg2[%c0_1, %c0_2] : memref<8x32xf32, #tpu.memory_space<vmem>>, vector<8x32xf32>
    %3 = arith.truncf %2 : vector<8x32xf32> to vector<8x32xbf16>
    %c0_3 = arith.constant 0 : index
    %c0_4 = arith.constant 0 : index
    %4 = vector.load %arg3[%c0_3, %c0_4] : memref<32x32xbf16, #tpu.memory_space<vmem>>, vector<32x32xbf16>
    %cst = arith.constant dense<0.000000e+00> : vector<8x32xf32>
    %5 = tpu.matmul %1, %4, %cst {dimension_numbers = #tpu.dot_dimension_numbers<[1], [0], [0], [1], [0, 0, 1, 1], [], []>} : vector<8x32xbf16>, vector<32x32xbf16>, vector<8x32xf32> -> vector<8x32xf32>
    %c0_5 = arith.constant 0 : index
    %c0_6 = arith.constant 0 : index
    %6 = vector.load %arg4[%c0_5, %c0_6] : memref<1x32xf32, #tpu.memory_space<vmem>>, vector<1x32xf32>
    %7 = vector.broadcast %6 : vector<1x32xf32> to vector<8x32xf32>
    %8 = arith.addf %5, %7 : vector<8x32xf32>
    %c0_7 = arith.constant 0 : index
    %c0_8 = arith.constant 0 : index
    %9 = vector.load %arg5[%c0_7, %c0_8] : memref<32x32xbf16, #tpu.memory_space<vmem>>, vector<32x32xbf16>
    %cst_9 = arith.constant dense<0.000000e+00> : vector<8x32xf32>
    %10 = tpu.matmul %3, %9, %cst_9 {dimension_numbers = #tpu.dot_dimension_numbers<[1], [0], [0], [1], [0, 0, 1, 1], [], []>} : vector<8x32xbf16>, vector<32x32xbf16>, vector<8x32xf32> -> vector<8x32xf32>
    %c0_10 = arith.constant 0 : index
    %c0_11 = arith.constant 0 : index
    %11 = vector.load %arg6[%c0_10, %c0_11] : memref<1x32xf32, #tpu.memory_space<vmem>>, vector<1x32xf32>
    %12 = vector.broadcast %11 : vector<1x32xf32> to vector<8x32xf32>
    %13 = arith.addf %10, %12 : vector<8x32xf32>
    %14 = arith.truncf %8 : vector<8x32xf32> to vector<8x32xbf16>
    %cst_12 = arith.constant 0.000000e+00 : bf16
    %15 = vector.broadcast %cst_12 : bf16 to vector<8x32xbf16>
    %16 = arith.maximumf %14, %15 : vector<8x32xbf16>
    %17 = arith.truncf %13 : vector<8x32xf32> to vector<8x32xbf16>
    %cst_13 = arith.constant 0.000000e+00 : bf16
    %18 = vector.broadcast %cst_13 : bf16 to vector<8x32xbf16>
    %19 = arith.maximumf %17, %18 : vector<8x32xbf16>
    %c0_14 = arith.constant 0 : index
    %c0_15 = arith.constant 0 : index
    %20 = vector.load %arg7[%c0_14, %c0_15] : memref<32x256xbf16, #tpu.memory_space<vmem>>, vector<32x256xbf16>
    %cst_16 = arith.constant dense<0.000000e+00> : vector<8x256xf32>
    %21 = tpu.matmul %16, %20, %cst_16 {dimension_numbers = #tpu.dot_dimension_numbers<[1], [0], [0], [1], [0, 0, 1, 1], [], []>} : vector<8x32xbf16>, vector<32x256xbf16>, vector<8x256xf32> -> vector<8x256xf32>
    %c0_17 = arith.constant 0 : index
    %c0_18 = arith.constant 0 : index
    %22 = vector.load %arg8[%c0_17, %c0_18] : memref<32x256xbf16, #tpu.memory_space<vmem>>, vector<32x256xbf16>
    %cst_19 = arith.constant dense<0.000000e+00> : vector<8x256xf32>
    %23 = tpu.matmul %19, %22, %cst_19 {dimension_numbers = #tpu.dot_dimension_numbers<[1], [0], [0], [1], [0, 0, 1, 1], [], []>} : vector<8x32xbf16>, vector<32x256xbf16>, vector<8x256xf32> -> vector<8x256xf32>
    %24 = arith.addf %21, %23 : vector<8x256xf32>
    %c0_20 = arith.constant 0 : index
    %c0_21 = arith.constant 0 : index
    %25 = vector.load %arg9[%c0_20, %c0_21] : memref<1x256xf32, #tpu.memory_space<vmem>>, vector<1x256xf32>
    %26 = vector.broadcast %25 : vector<1x256xf32> to vector<8x256xf32>
    %27 = arith.addf %24, %26 : vector<8x256xf32>
    %28 = arith.truncf %27 : vector<8x256xf32> to vector<8x256xbf16>
    %cst_22 = arith.constant 0.000000e+00 : bf16
    %29 = vector.broadcast %cst_22 : bf16 to vector<8x256xbf16>
    %30 = arith.maximumf %28, %29 : vector<8x256xbf16>
    %c0_23 = arith.constant 0 : index
    %c0_24 = arith.constant 0 : index
    %31 = vector.load %arg10[%c0_23, %c0_24] : memref<256x128xbf16, #tpu.memory_space<vmem>>, vector<256x128xbf16>
    %cst_25 = arith.constant dense<0.000000e+00> : vector<8x128xf32>
    %32 = tpu.matmul %30, %31, %cst_25 {dimension_numbers = #tpu.dot_dimension_numbers<[1], [0], [0], [1], [0, 0, 1, 1], [], []>} : vector<8x256xbf16>, vector<256x128xbf16>, vector<8x128xf32> -> vector<8x128xf32>
    %c0_26 = arith.constant 0 : index
    %c0_27 = arith.constant 0 : index
    %33 = vector.load %arg11[%c0_26, %c0_27] : memref<1x128xf32, #tpu.memory_space<vmem>>, vector<1x128xf32>
    %34 = vector.broadcast %33 : vector<1x128xf32> to vector<8x128xf32>
    %35 = arith.addf %32, %34 : vector<8x128xf32>
    %c0_28 = arith.constant 0 : index
    %c0_29 = arith.constant 0 : index
    %36 = vector.load %arg12[%c0_28, %c0_29] : memref<8x128xf32, #tpu.memory_space<vmem>>, vector<8x128xf32>
    tpu.vector_store %arg12[%c0_28, %c0_29], %35 {strides = array<i32>} : memref<8x128xf32, #tpu.memory_space<vmem>>, vector<8x128xf32>,
    return
  }
  func.func @transform_0(%arg0: i32) -> (i32, i32) {
    %c0_i32 = arith.constant 0 : i32
    %c0_i32_0 = arith.constant 0 : i32
    return %arg0, %c0_i32 : i32, i32
  }
  func.func @transform_1(%arg0: i32) -> (i32, i32) {
    %c0_i32 = arith.constant 0 : i32
    %c0_i32_0 = arith.constant 0 : i32
    return %arg0, %c0_i32 : i32, i32
  }
  func.func @transform_2(%arg0: i32) -> (i32, i32) {
    %c0_i32 = arith.constant 0 : i32
    %c0_i32_0 = arith.constant 0 : i32
    %c0_i32_1 = arith.constant 0 : i32
    return %c0_i32, %c0_i32_0 : i32, i32
  }
  func.func @transform_3(%arg0: i32) -> (i32, i32) {
    %c0_i32 = arith.constant 0 : i32
    %c0_i32_0 = arith.constant 0 : i32
    %c0_i32_1 = arith.constant 0 : i32
    return %c0_i32, %c0_i32_0 : i32, i32
  }
  func.func @transform_4(%arg0: i32) -> (i32, i32) {
    %c0_i32 = arith.constant 0 : i32
    %c0_i32_0 = arith.constant 0 : i32
    %c0_i32_1 = arith.constant 0 : i32
    return %c0_i32, %c0_i32_0 : i32, i32
  }
  func.func @transform_5(%arg0: i32) -> (i32, i32) {
    %c0_i32 = arith.constant 0 : i32
    %c0_i32_0 = arith.constant 0 : i32
    %c0_i32_1 = arith.constant 0 : i32
    return %c0_i32, %c0_i32_0 : i32, i32
  }
  func.func @transform_6(%arg0: i32) -> (i32, i32) {
    %c0_i32 = arith.constant 0 : i32
    %c0_i32_0 = arith.constant 0 : i32
    %c0_i32_1 = arith.constant 0 : i32
    return %c0_i32, %c0_i32_0 : i32, i32
  }
  func.func @transform_7(%arg0: i32) -> (i32, i32) {
    %c0_i32 = arith.constant 0 : i32
    %c0_i32_0 = arith.constant 0 : i32
    %c0_i32_1 = arith.constant 0 : i32
    return %c0_i32, %c0_i32_0 : i32, i32
  }
  func.func @transform_8(%arg0: i32) -> (i32, i32) {
    %c0_i32 = arith.constant 0 : i32
    %c0_i32_0 = arith.constant 0 : i32
    %c0_i32_1 = arith.constant 0 : i32
    return %c0_i32, %c0_i32_0 : i32, i32
  }
  func.func @transform_9(%arg0: i32) -> (i32, i32) {
    %c0_i32 = arith.constant 0 : i32
    %c0_i32_0 = arith.constant 0 : i32
    %c0_i32_1 = arith.constant 0 : i32
    return %c0_i32, %c0_i32_0 : i32, i32
  }
  func.func @transform_10(%arg0: i32) -> (i32, i32) {
    %c0_i32 = arith.constant 0 : i32
    %c0_i32_0 = arith.constant 0 : i32
    %c0_i32_1 = arith.constant 0 : i32
    return %c0_i32, %c0_i32_0 : i32, i32
  }
  func.func @transform_11(%arg0: i32) -> (i32, i32) {
    %c0_i32 = arith.constant 0 : i32
    %c0_i32_0 = arith.constant 0 : i32
    return %arg0, %c0_i32 : i32, i32
  }
}

</mosaic_0001>

<bundles_post_ra>
// kernel: tpu_custom_call.1
= control target key start
LH: loop header
LB: loop body
LE: loop exit
PB: predicated region body
PF: predicated region fallthrough
CT: control target
= control target key end

     0   :  { %16 = vsyncpa [#allocation3], 0  ;;  %s1149_s0 = inlined_call_operand.hbm [shape: f32[8,32], index: 0, kind: input, shape index: {}]   ;;  %s1150_s1 = inlined_call_operand.hbm [shape: f32[8,32], index: 1, kind: input, shape index: {}]   ;;  %s1151_s2 = inlined_call_operand.hbm [shape: bf16[32,32], index: 2, kind: input, shape index: {}]   ;;  %s1152_s3 = inlined_call_operand.vmem [shape: f32[1,32], index: 3, kind: input, shape index: {}]   ;;  %s1153_s4 = inlined_call_operand.hbm [shape: bf16[32,32], index: 4, kind: input, shape index: {}]   ;;  %s1154_s5 = inlined_call_operand.vmem [shape: f32[1,32], index: 5, kind: input, shape index: {}]   ;;  %s1155_s6 = inlined_call_operand.hbm [shape: bf16[32,256], index: 6, kind: input, shape index: {}]   ;;  %s1156_s7 = inlined_call_operand.hbm [shape: bf16[32,256], index: 7, kind: input, shape index: {}]   ;;  %s1157_s8 = inlined_call_operand.vmem [shape: f32[1,256], index: 8, kind: input, shape index: {}]   ;;  %s1158_s9 = inlined_call_operand.hbm [shape: bf16[256,128], index: 9, kind: input, shape index: {}]   ;;  %s1159_s10 = inlined_call_operand.vmem [shape: f32[1,128], index: 10, kind: input, shape index: {}]   ;;  %s1160_s11 = inlined_call_operand.hbm [shape: f32[8,128], index: 11, kind: output, shape index: {}]  }
   0x1   :  { %17 = vsyncpa [#allocation6], 0 }
   0x2   :  { %18 = vsyncpa [#allocation9], 0 }
   0x3   :  { %19 = vsyncpa [#allocation12], 0 }
   0x4   :  { %20 = vsyncpa [#allocation4], 0  ;;  %s932_s17 = smov [#allocation5]   ;;  %s746_s21 = scalar_lea.hbm %s1150_s1, 128 }
   0x5   :  { %s37_s18 = sshll.u32 %s932_s17, 4  ;;  %p747_p0 = scmp.ne.s32.totalorder %s1150_s1, %s746_s21  ;;  %s38_s18 = int_to_ptr.vmem [resolvable:$true] %s37_s18 }
   0x6   :  { %p750_p1 = scmp.lt.u32.totalorder %s746_s21, %s1150_s1 }
   0x8   :  { %p752_p2 = pnand %p750_p1, %p747_p0 }
   0xa   :  { %755 = shalt.err (!%p752_p2)
}
   0xb   :  { %s756_s26 = scalar_lea.vmem %s38_s18, 128  ;;  %p761_p4 = scmp.lt.s32.totalorder %s38_s18, %s38_s18 }
   0xc   :  { %p757_p3 = scmp.ne.s32.totalorder %s38_s18, %s756_s26  ;;  %p762_p5 = scmp.lt.s32.totalorder %s756_s26, %s756_s26 }
   0xe   :  { %p763_p6 = por %p762_p5, %p761_p4 }
  0x10   :  { %p764_p7 = pnand %p763_p6, %p757_p3 }
  0x12   :  { %767 = shalt.err (!%p764_p7)
}
  0x13   :  { %40 = dma.hbm_to_vmem [thread:$0]  %s1150_s1, 128, %s38_s18, [#allocation6]  }
  0x14   :  { %s933_s29 = smov [#allocation8]   ;;  %s768_s14 = scalar_lea.hbm %s1153_s4, 256 }
  0x15   :  { %s60_s30 = sshll.u32 %s933_s29, 4  ;;  %p769_p8 = scmp.ne.s32.totalorder %s1153_s4, %s768_s14  ;;  %s61_s30 = int_to_ptr.vmem [resolvable:$true] %s60_s30 }
  0x16   :  { %p772_p9 = scmp.lt.u32.totalorder %s768_s14, %s1153_s4 }
  0x18   :  { %p774_p10 = pnand %p772_p9, %p769_p8 }
  0x1a   :  { %777 = shalt.err (!%p774_p10)
}
  0x1b   :  { %s778_s20 = scalar_lea.vmem %s61_s30, 256  ;;  %p783_p12 = scmp.lt.s32.totalorder %s61_s30, %s61_s30 }
  0x1c   :  { %p779_p11 = scmp.ne.s32.totalorder %s61_s30, %s778_s20  ;;  %p784_p13 = scmp.lt.s32.totalorder %s778_s20, %s778_s20 }
  0x1e   :  { %p785_p0 = por %p784_p13, %p783_p12 }
  0x20   :  { %p786_p1 = pnand %p785_p0, %p779_p11 }
  0x22   :  { %789 = shalt.err (!%p786_p1)
}
  0x23   :  { %s934_s1 = smov 64   ;;  %s935_s18 = smov 4  }
  0x24   :  { %66 = dma.hbm_to_vmem [thread:$0]  %s1153_s4, 256, %s61_s30, [#allocation9], %s934_s1, %s934_s1, %s935_s18  }
  0x25   :  { %s936_s23 = smov [#allocation11]   ;;  %s937_s25 = smov [#allocation2]  }
  0x26   :  { %s86_s24 = sshll.u32 %s936_s23, 4  ;;  %s27_s26 = sshll.u32 %s937_s25, 4  ;;  %s87_s24 = int_to_ptr.vmem [resolvable:$true] %s86_s24  ;;  %s28_s26 = int_to_ptr.vmem [resolvable:$true] %s27_s26 }
  0x27   :  { %s790_s29 = scalar_lea.hbm %s1156_s7, 512 }
  0x28   :  { %p791_p2 = scmp.ne.s32.totalorder %s1156_s7, %s790_s29  ;;  %p794_p3 = scmp.lt.u32.totalorder %s790_s29, %s1156_s7 }
  0x2a   :  { %p796_p4 = pnand %p794_p3, %p791_p2 }
  0x2c   :  { %799 = shalt.err (!%p796_p4)
}
  0x2d   :  { %s800_s4 = scalar_lea.vmem %s87_s24, 512  ;;  %p805_p6 = scmp.lt.s32.totalorder %s87_s24, %s87_s24 }
  0x2e   :  { %p801_p5 = scmp.ne.s32.totalorder %s87_s24, %s800_s4  ;;  %p806_p7 = scmp.lt.s32.totalorder %s800_s4, %s800_s4 }
  0x30   :  { %p807_p8 = por %p806_p7, %p805_p6 }
  0x32   :  { %p808_p9 = pnand %p807_p8, %p801_p5 }
  0x34   :  { %811 = shalt.err (!%p808_p9)
}
  0x35   :  { %s938_s30 = smov 128   ;;  %s939_s16 = smov 8  }
  0x36   :  { %92 = dma.hbm_to_vmem [thread:$0]  %s1156_s7, 512, %s87_s24, [#allocation12], %s938_s30, %s938_s30, %s939_s16  }
  0x37   :  { %s812_s22 = scalar_lea.hbm %s1149_s0, 128 }
  0x38   :  { %p813_p10 = scmp.ne.s32.totalorder %s1149_s0, %s812_s22  ;;  %p816_p11 = scmp.lt.u32.totalorder %s812_s22, %s1149_s0 }
  0x3a   :  { %p818_p12 = pnand %p816_p11, %p813_p10 }
  0x3c   :  { %821 = shalt.err (!%p818_p12)
}
  0x3d   :  { %s822_s29 = scalar_lea.vmem %s28_s26, 128  ;;  %p827_p0 = scmp.lt.s32.totalorder %s28_s26, %s28_s26 }
  0x3e   :  { %p823_p13 = scmp.ne.s32.totalorder %s28_s26, %s822_s29  ;;  %p828_p1 = scmp.lt.s32.totalorder %s822_s29, %s822_s29 }
  0x40   :  { %p829_p2 = por %p828_p1, %p827_p0 }
  0x42   :  { %p830_p3 = pnand %p829_p2, %p823_p13 }
  0x44   :  { %833 = shalt.err (!%p830_p3)
}
  0x45   :  { %30 = dma.hbm_to_vmem [thread:$0]  %s1149_s0, 128, %s28_s26, [#allocation3]  }
  0x46   :  { %s940_s12 = smov [#allocation7]   ;;  %s941_s14 = smov [#allocation10]  }
  0x47   :  { %s46_s13 = sshll.u32 %s940_s12, 4  ;;  %s74_s15 = sshll.u32 %s941_s14, 4  ;;  %s47_s13 = int_to_ptr.vmem [resolvable:$true] %s46_s13  ;;  %s1061_s15 = int_to_ptr.vmem [resolvable:$true] %s74_s15 }
  0x48   :  { %s834_s19 = scalar_lea.hbm %s1151_s2, 256 }
  0x49   :  { %p835_p4 = scmp.ne.s32.totalorder %s1151_s2, %s834_s19  ;;  %p838_p5 = scmp.lt.u32.totalorder %s834_s19, %s1151_s2 }
  0x4b   :  { %p840_p6 = pnand %p838_p5, %p835_p4 }
  0x4d   :  { %843 = shalt.err (!%p840_p6)
}
  0x4e   :  { %s844_s0 = scalar_lea.vmem %s47_s13, 256  ;;  %p849_p8 = scmp.lt.s32.totalorder %s47_s13, %s47_s13 }
  0x4f   :  { %p845_p7 = scmp.ne.s32.totalorder %s47_s13, %s844_s0  ;;  %p850_p9 = scmp.lt.s32.totalorder %s844_s0, %s844_s0 }
  0x51   :  { %p851_p10 = por %p850_p9, %p849_p8 }
  0x53   :  { %p852_p11 = pnand %p851_p10, %p845_p7 }
  0x55   :  { %855 = shalt.err (!%p852_p11)
}
  0x56   :  { %52 = dma.hbm_to_vmem [thread:$0]  %s1151_s2, 256, %s47_s13, [#allocation6], %s934_s1, %s934_s1, %s935_s18  }
  0x57   :  { %s856_s29 = scalar_lea.hbm %s1155_s6, 512 }
  0x58   :  { %p857_p12 = scmp.ne.s32.totalorder %s1155_s6, %s856_s29  ;;  %p860_p13 = scmp.lt.u32.totalorder %s856_s29, %s1155_s6 }
  0x5a   :  { %p862_p0 = pnand %p860_p13, %p857_p12 }
  0x5c   :  { %865 = shalt.err (!%p862_p0)
}
  0x5d   :  { %s866_s4 = scalar_lea.vmem %s1061_s15, 512  ;;  %p871_p2 = scmp.lt.s32.totalorder %s1061_s15, %s1061_s15 }
  0x5e   :  { %p867_p1 = scmp.ne.s32.totalorder %s1061_s15, %s866_s4  ;;  %p872_p3 = scmp.lt.s32.totalorder %s866_s4, %s866_s4 }
  0x60   :  { %p873_p4 = por %p872_p3, %p871_p2 }
  0x62   :  { %p874_p5 = pnand %p873_p4, %p867_p1 }
  0x64   :  { %877 = shalt.err (!%p874_p5)
}
  0x65   :  { %80 = dma.hbm_to_vmem [thread:$0]  %s1155_s6, 512, %s1061_s15, [#allocation9], %s938_s30, %s938_s30, %s939_s16  }
  0x66   :  { %s942_s17 = smov [#allocation13]   ;;  %s878_s22 = scalar_lea.hbm %s1158_s9, 2048 }
  0x67   :  { %s100_s19 = sshll.u32 %s942_s17, 4  ;;  %p879_p6 = scmp.ne.s32.totalorder %s1158_s9, %s878_s22  ;;  %s101_s19 = int_to_ptr.vmem [resolvable:$true] %s100_s19 }
  0x68   :  { %p882_p7 = scmp.lt.u32.totalorder %s878_s22, %s1158_s9 }
  0x6a   :  { %p884_p8 = pnand %p882_p7, %p879_p6 }
  0x6c   :  { %887 = shalt.err (!%p884_p8)
}
  0x6d   :  { %s888_s27 = scalar_lea.vmem %s101_s19, 2048  ;;  %p893_p10 = scmp.lt.s32.totalorder %s101_s19, %s101_s19 }
  0x6e   :  { %p889_p9 = scmp.ne.s32.totalorder %s101_s19, %s888_s27  ;;  %p894_p11 = scmp.lt.s32.totalorder %s888_s27, %s888_s27 }
  0x70   :  { %p895_p12 = por %p894_p11, %p893_p10 }
  0x72   :  { %p896_p13 = pnand %p895_p12, %p889_p9 }
  0x74   :  { %899 = shalt.err (!%p896_p13)
}
  0x75   :  { %106 = dma.hbm_to_vmem [thread:$0]  %s1158_s9, 2048, %s101_s19, [#allocation12], %s934_s1, %s934_s1, %s935_s18  }
  0x76   :  { %922 = dma.done.wait [#allocation3], 128  }
  0x77   :  { %923 = vsyncadd [#allocation3], 4294967168 }
  0x78   :  { %924 = dma.done.wait [#allocation6], 384  }
  0x79   :  { %925 = vsyncadd [#allocation6], 4294966912 }
  0x7a   :  { %926 = dma.done.wait [#allocation9], 768  }
  0x7b   :  { %927 = vsyncadd [#allocation9], 4294966528 }
  0x7c   :  { %928 = dma.done.wait [#allocation12], 2560  }
  0x7d   :  { %929 = vsyncadd [#allocation12], 4294964736  ;;  %v943_v0 = vmov 0.0   ;;  %vm944_vm0 = vmmov 0   ;;  %v714_v1 = vld [vmem:[#allocation7] sm:$0xff]   ;;  %v715_v2 = vld [vmem:[#allocation7 + $0x8] sm:$0xff]   ;;  %v410_v50 = vlaneseq }
  0x7e   :  { %683 = vmatprep.subr.bf16.mxu1 %v943_v0  ;;  %687 = vmatprep.mubr.msk.bf16.mxu1 %vm944_vm0, %v943_v0  ;;  %v131_v3 = vld [vmem:[#allocation2] sm:$0xff]  ;;  %vm158_vm1 = vcmask 261120   ;;  %v717_v6 = vld [vmem:[#allocation8 + $0x8] sm:$0xff]   ;;  %v945_v9 = vmov 0   ;;  %v718_v10 = vld [vmem:[#allocation11] ss:$8 sps:$4 sm:$0xff]  }
  0x7f   :  { %684 = vmatpush3.bf16.msra.mxu1 %v714_v1  ;;  %v716_v4 = vld [vmem:[#allocation8] sm:$0xff]   ;;  %v132_v5 = vpack.c.bf16 %v131_v3, %v131_v3  ;;  %v133_v7 = vld [vmem:[#allocation5] sm:$0xff]  ;;  %v720_v11 = vld [vmem:[#allocation11 + $0x4] ss:$8 sps:$4 sm:$0xff]   ;;  %v411_v51 = vshrl.u32 %v410_v50, 7  ;;  %s946_s28 = smov [#allocation14]  }
  0x80   :  { %685 = vmatprep.subr.bf16.mxu1 %v943_v0  ;;  %v134_v8 = vpack.c.bf16 %v133_v7, %v133_v7  ;;  %v723_v12 = vld [vmem:[#allocation11 + $0x14] ss:$8 sps:$4 sm:$0xff]   ;;  %v721_v13 = vld [vmem:[#allocation11 + $0x10] ss:$8 sps:$4 sm:$0xff]   ;;  %v726_v14 = vld [vmem:[#allocation10 + $0x4] ss:$8 sps:$4 sm:$0xff]  }
  0x81   :  { %v730_v15 = vld [vmem:[#allocation13 + $0x40] sm:$0xff]   ;;  %v732_v17 = vld [vmem:[#allocation13 + $0x48] sm:$0xff]   ;;  %v734_v19 = vld [vmem:[#allocation13 + $0x50] sm:$0xff]   ;;  %v412_v56 = vsub.s32 0, %v411_v51  ;;  %v416_v58 = vsub.s32 1, %v411_v51  ;;  %s608_s29 = sshll.u32 %s946_s28, 4  ;;  %s609_s29 = int_to_ptr.vmem [resolvable:$true] %s608_s29 }
  0x82   :  { %v731_v16 = vld [vmem:[#allocation13] sm:$0xff]   ;;  %661 = vmatprep.subr.bf16.mxu0 %v730_v15  ;;  %v733_v18 = vld [vmem:[#allocation13 + $0x8] sm:$0xff]   ;;  %v735_v20 = vld [vmem:[#allocation13 + $0x10] sm:$0xff]   ;;  %s900_s7 = scalar_lea.vmem %s609_s29, 128  ;;  %p905_p1 = scmp.lt.s32.totalorder %s609_s29, %s609_s29 }
  0x83   :  { %686 = vmatpush3.bf16.msra.mxu1 %v715_v2  ;;  %662 = vmatpush3.bf16.msra.mxu0 %v731_v16  ;;  %v736_v21 = vld [vmem:[#allocation13 + $0x58] sm:$0xff]   ;;  %v624_v26 = vld [vmem:[%s1154_s5] ss:$0 sm:$0xff]  ;;  %v724_v34 = vld [vmem:[#allocation10] ss:$8 sps:$4 sm:$0xff]   ;;  %p901_p0 = scmp.ne.s32.totalorder %s609_s29, %s900_s7  ;;  %p906_p2 = scmp.lt.s32.totalorder %s900_s7, %s900_s7 }
  0x84   :  { %691 = vmatprep.subr.bf16.mxu1 %v943_v0  ;;  %663 = vmatprep.subr.bf16.mxu0 %v732_v17  ;;  %v620_v30 = vld [vmem:[%s1152_s3] ss:$0 sm:$0xff]  ;;  %v729_v37 = vld [vmem:[#allocation10 + $0x14] ss:$8 sps:$4 sm:$0xff]   ;;  %v738_v42 = vld [vmem:[#allocation13 + $0x60] sm:$0xff]  }
  0x85   :  { %v727_v38 = vld [vmem:[#allocation10 + $0x10] ss:$8 sps:$4 sm:$0xff]   ;;  %v739_v43 = vld [vmem:[#allocation13 + $0x20] sm:$0xff]   ;;  %v740_v44 = vld [vmem:[#allocation13 + $0x68] sm:$0xff]   ;;  %p907_p3 = por %p906_p2, %p905_p1 }
  0x86   :  { %688 = vmatmul.mubr.msk.bf16.vlgmr.msra.gmra.mrb[0].mxu1 %vm158_vm1, %v132_v5  ;;  %v737_v41 = vld [vmem:[#allocation13 + $0x18] sm:$0xff]   ;;  %v741_v45 = vld [vmem:[#allocation13 + $0x28] sm:$0xff]   ;;  %v742_v46 = vld [vmem:[#allocation13 + $0x70] sm:$0xff]  }
  0x87   :  { %692 = vmatpush3.bf16.msra.mxu1 %v716_v4  ;;  %695 = vmatprep.mubr.msk.bf16.mxu1 %vm944_vm0, %v943_v0  ;;  %v743_v47 = vld [vmem:[#allocation13 + $0x30] sm:$0xff]   ;;  %v744_v48 = vld [vmem:[#allocation13 + $0x78] sm:$0xff]   ;;  %p908_p4 = pnand %p907_p3, %p901_p0 }
  0x88   :  { %693 = vmatprep.subr.bf16.mxu1 %v943_v0  ;;  %664 = vmatpush3.bf16.msra.mxu0 %v733_v18  ;;  %v745_v49 = vld [vmem:[#allocation13 + $0x38] sm:$0xff]   ;;  %v408_v57 = vld [vmem:[%s1157_s8] sm:$0x3] }
  0x89   :  { %665 = vmatprep.subr.bf16.mxu0 %v734_v19  ;;  %v413_v59 = vrot.slane %v408_v57, %v412_v56  ;;  %v417_v61 = vrot.slane %v408_v57, %v416_v58 }
  0x8b   :  { %694 = vmatpush3.bf16.msra.mxu1 %v717_v6 }
  0x8c   :  { %303 = vmatprep.subr.bf16.mxu1 %v720_v11  ;;  %666 = vmatpush3.bf16.msra.mxu0 %v735_v20  ;;  %v638_v11 = vld [vmem:[%s1159_s10] ss:$0 sm:$0xff] }
  0x8d   :  { %667 = vmatprep.subr.bf16.mxu0 %v736_v21 }
  0x8e   :  { %696 = vmatmul.mubr.msk.bf16.vlgmr.msra.gmra.mrb[4].mxu1 %vm158_vm1, %v134_v8 }
  0x8f   :  { %335 = vmatprep.mubr.bf16.mxu1 %v945_v9  ;;  %304 = vmatpush1.bf16.msra.mxu1 %v718_v10 }
  0x90   :  { %305 = vmatprep.subr.bf16.mxu1 %v723_v12  ;;  %668 = vmatpush3.bf16.msra.mxu0 %v737_v41 }
  0x91   :  { %669 = vmatprep.subr.bf16.mxu0 %v738_v42 }
  0x93   :  { %306 = vmatpush1.bf16.msra.mxu1 %v721_v13 }
  0x94   :  { %367 = vmatprep.subr.bf16.mxu1 %v726_v14  ;;  %670 = vmatpush3.bf16.msra.mxu0 %v739_v43 }
  0x95   :  { %671 = vmatprep.subr.bf16.mxu0 %v740_v44 }
  0x98   :  { %672 = vmatpush3.bf16.msra.mxu0 %v741_v45 }
  0x99   :  { %673 = vmatprep.subr.bf16.mxu0 %v742_v46 }
  0x9c   :  { %674 = vmatpush3.bf16.msra.mxu0 %v743_v47 }
  0x9d   :  { %675 = vmatprep.subr.bf16.mxu0 %v744_v48 }
  0xa0   :  { %676 = vmatpush3.bf16.msra.mxu0 %v745_v49 }
 0x159   :  { %v196_v22 = vpop.f32.mrb[0].mxu1 }
 0x15a   :  { %v689_v23 = vpop.f32.mrb[1].mxu1  ;;  %v197_v35 = vadd.f32 %v620_v30, %v196_v22 }
 0x15b   :  { %v199_v24 = vpop.f32.mrb[2].mxu1 }
 0x15c   :  { %v690_v25 = vpop.f32.mrb[3].mxu1  ;;  %v268_v39 = vpack.c.bf16 %v197_v35, %v197_v35 }
 0x15e   :  { %v269_v40 = vmax.bf16 %v945_v9, %v268_v39 }
 0x161   :  { %v262_v27 = vpop.f32.mrb[4].mxu1 }
 0x162   :  { %v263_v28 = vadd.f32 %v624_v26, %v262_v27  ;;  %v697_v29 = vpop.f32.mrb[5].mxu1 }
 0x163   :  { %v265_v31 = vpop.f32.mrb[6].mxu1 }
 0x164   :  { %v270_v32 = vpack.c.bf16 %v263_v28, %v263_v28  ;;  %v698_v33 = vpop.f32.mrb[7].mxu1 }
 0x166   :  { %v271_v36 = vmax.bf16 %v945_v9, %v270_v32 }
 0x168   :  { %632 = vmatmul.mubr.msk.bf16.vlgmr.msra.gmra.mrb[8].mxu1 %vm158_vm1, %v271_v36 }
 0x169   :  { %368 = vmatpush1.bf16.msra.mxu1 %v724_v34  ;;  %399 = vmatprep.mubr.bf16.mxu1 %v945_v9 }
 0x16a   :  { %369 = vmatprep.subr.bf16.mxu1 %v729_v37 }
 0x16d   :  { %370 = vmatpush1.bf16.msra.mxu1 %v727_v38 }
 0x170   :  { %637 = vmatmul.mubr.msk.bf16.vlgmr.msra.gmra.mrb[12].mxu1 %vm158_vm1, %v269_v40 }
 0x23b   :  { %v337_v52 = vpop.f32.mrb[8].mxu1 }
 0x23c   :  { %v339_v53 = vpop.f32.mrb[9].mxu1 }
 0x23d   :  { %v341_v54 = vpop.f32.mrb[10].mxu1 }
 0x23e   :  { %v342_v55 = vpop.f32.mrb[11].mxu1 }
 0x243   :  { %v401_v60 = vpop.f32.mrb[12].mxu1 }
 0x244   :  { %v402_v62 = vadd.f32 %v401_v60, %v337_v52  ;;  %v403_v63 = vpop.f32.mrb[13].mxu1 }
 0x245   :  { %v404_v0 = vadd.f32 %v403_v63, %v339_v53  ;;  %v405_v1 = vpop.f32.mrb[14].mxu1 }
 0x246   :  { %v420_v2 = vadd.f32 %v413_v59, %v402_v62  ;;  %v406_v3 = vpop.f32.mrb[15].mxu1 }
 0x247   :  { %v421_v4 = vadd.f32 %v417_v61, %v404_v0 }
 0x248   :  { %v422_v5 = vpack.c.bf16 %v420_v2, %v420_v2 }
 0x249   :  { %v423_v6 = vpack.c.bf16 %v421_v4, %v421_v4 }
 0x24a   :  { %v424_v8 = vmax.bf16 %v945_v9, %v422_v5 }
 0x24b   :  { %v425_v7 = vmax.bf16 %v945_v9, %v423_v6 }
 0x24d   :  { %593 = vmatprep.mubr.bf16.mxu0 %v425_v7 }
 0x24e   :  { %594 = vmatmul.mubr.bf16.vlgmr.msra.gmra.mrb[0].mxu0 %v424_v8 }
 0x321   :  { %v677_v10 = vpop.f32.mrb[0].mxu0 }
 0x322   :  { %v678_v12 = vpop.f32.mrb[1].mxu0 }
 0x323   :  { %v679_v13 = vadd.f32 %v678_v12, %v677_v10  ;;  %v680_v14 = vpop.f32.mrb[2].mxu0 }
 0x324   :  { %v681_v15 = vpop.f32.mrb[3].mxu0 }
 0x325   :  { %v596_v16 = vadd.f32 %v679_v13, %v638_v11 }
 0x327   :  { %601 = vst [vmem:[#allocation14] sm:$0xff] %v596_v16 }
 0x328   :  { %911 = shalt.err (!%p908_p4)
}
 0x329   :  { %s912_s10 = scalar_lea.hbm %s1160_s11, 128 }
 0x32a   :  { %p913_p5 = scmp.ne.s32.totalorder %s1160_s11, %s912_s10  ;;  %p916_p6 = scmp.lt.u32.totalorder %s912_s10, %s1160_s11 }
 0x32c   :  { %p918_p7 = pnand %p916_p6, %p913_p5 }
 0x32e   :  { %921 = shalt.err (!%p918_p7)
}
 0x32f   :  { %611 = dma.vmem_to_hbm [thread:$0]  %s609_s29, 128, %s1160_s11, [#allocation4]  }
 0x330   :  { %930 = dma.done.wait [#allocation4], 128  }
 0x331   :  { %931 = vsyncadd [#allocation4], 4294967168 }
 0x332   :  { %615 = vsyncpa [#allocation3], 1 }
 0x333   :  { %616 = vsyncpa [#allocation6], 1 }
 0x334   :  { %617 = vsyncpa [#allocation9], 1 }
 0x335   :  { %618 = vsyncpa [#allocation12], 1 }
 0x336   :  { %619 = vsyncpa [#allocation4], 1 }

</bundles_post_ra>
